<compile_context>
chip_gen: v7x
topology: tpu7x:2x2x1
jax: 0.10.0
libtpu: 0.0.40
codegen_flags: <defaults>
</compile_context>

<pallas_src>
import functools

import jax
import jax.numpy as jnp
from jax.experimental import pallas as pl
from jax.experimental.pallas import tpu as pltpu

HIDDEN = 150          # matches nn.Linear(input_dim, 150) / Linear(150, 150)
HIDDEN_PAD = 256      # MXU/lane aligned hidden width (zero-padded)
LANE = 128            # TPU lane width


def _round_up(x, m):
    return ((x + m - 1) // m) * m


def _mlp_kernel(x_ref, w1_ref, b1_ref, w2_ref, b2_ref, w3_ref, b3_ref, o_ref):
    # Entire 3-layer MLP hot path (3 matmuls + bias + ReLU) in one kernel.
    # Matmul operands are bf16 (MXU-native on v5e/v6e/v7x), accumulation f32.
    x = x_ref[...].astype(jnp.bfloat16)                          # (tm, D_in)

    h1 = jnp.dot(x, w1_ref[...], preferred_element_type=jnp.float32)
    h1 = jnp.maximum(h1 + b1_ref[...], 0.0)                      # f32 (tm, 256)

    h2 = jnp.dot(h1.astype(jnp.bfloat16), w2_ref[...],
                 preferred_element_type=jnp.float32)
    h2 = jnp.maximum(h2 + b2_ref[...], 0.0)                      # f32 (tm, 256)

    out = jnp.dot(h2.astype(jnp.bfloat16), w3_ref[...],
                  preferred_element_type=jnp.float32)
    o_ref[...] = (out + b3_ref[...]).astype(o_ref.dtype)         # (tm, D_out_pad)


def prepare_params(params):
    """One-time: pad hidden 150->256, output -> multiple of 128, cast weights
    to bf16 (biases stay f32 for the f32 bias-add).  Padding is exact zeros,
    so it contributes 0 through ReLU and downstream matmuls."""
    w1, b1, w2, b2, w3, b3 = params
    d_out = w3.shape[1]
    d_out_p = _round_up(d_out, LANE)
    hp = HIDDEN_PAD - HIDDEN
    f32, bf16 = jnp.float32, jnp.bfloat16

    w1p = jnp.pad(w1.astype(f32), ((0, 0), (0, hp))).astype(bf16)
    b1p = jnp.pad(b1.astype(f32).reshape(1, -1), ((0, 0), (0, hp)))
    w2p = jnp.pad(w2.astype(f32), ((0, hp), (0, hp))).astype(bf16)
    b2p = jnp.pad(b2.astype(f32).reshape(1, -1), ((0, 0), (0, hp)))
    w3p = jnp.pad(w3.astype(f32), ((0, hp), (0, d_out_p - d_out))).astype(bf16)
    b3p = jnp.pad(b3.astype(f32).reshape(1, -1), ((0, 0), (0, d_out_p - d_out)))
    return (w1p, b1p, w2p, b2p, w3p, b3p), d_out


@functools.partial(jax.jit, static_argnames=("d_out", "block_m"))
def as_regression_forward(x, padded_params, d_out, block_m=1024):
    """x: (B, input_dim) f32 -> (B, output_dim) f32.
    padded_params: output of prepare_params (already padded / bf16)."""
    w1p, b1p, w2p, b2p, w3p, b3p = padded_params
    B, d_in = x.shape
    d_out_p = w3p.shape[1]
    x = x.astype(jnp.float32)

    # --- batch tiling ------------------------------------------------------
    # Large MXU-sized tile; shrink for tiny batches; for large batches cap the
    # tile so the grid has >=2 steps (keeps both v7x TensorCores busy via the
    # "parallel" batch axis).  Partial last block handled by Pallas (no pad).
    bm = min(block_m, _round_up(B, 8))
    if B >= 512:
        bm = min(bm, max(256, _round_up(pl.cdiv(B, 2), 256)))
    grid = (pl.cdiv(B, bm),)

    # Weights / biases are small; every grid step sees the full tensors
    # (block_shape == full array dims, so no (8,128) divisibility required).
    full = lambda a: pl.BlockSpec(a.shape, lambda i: (0,) * a.ndim)

    weight_bytes = (2 * (w1p.size + w2p.size + w3p.size)
                    + 4 * (b1p.size + b2p.size + b3p.size))
    cost = pl.CostEstimate(
        flops=2 * B * (d_in * HIDDEN_PAD
                       + HIDDEN_PAD * HIDDEN_PAD
                       + HIDDEN_PAD * d_out_p),
        transcendentals=0,
        bytes_accessed=4 * B * (d_in + d_out_p) + weight_bytes,
    )

    out_p = pl.pallas_call(
        _mlp_kernel,
        out_shape=jax.ShapeDtypeStruct((B, d_out_p), jnp.float32),
        grid_spec=pltpu.PrefetchScalarGridSpec(
            num_scalar_prefetch=0,
            grid=grid,
            in_specs=[
                pl.BlockSpec((bm, d_in), lambda i: (i, 0)),     # x tile
                full(w1p), full(b1p),
                full(w2p), full(b2p),
                full(w3p), full(b3p),
            ],
            out_specs=pl.BlockSpec((bm, d_out_p), lambda i: (i, 0)),
        ),
        compiler_params=pltpu.CompilerParams(
            dimension_semantics=("parallel",),      # megacore-shardable batch
            vmem_limit_bytes=32 * 1024 * 1024,      # safe vs v7x 64 MiB VMEM
        ),
        cost_estimate=cost,
    )(x, w1p, b1p, w2p, b2p, w3p, b3p)

    # Strip output-lane padding.
    return out_p[:, :d_out]


def init_params(key, input_dim, output_dim):
    """Deterministic init mimicking PyTorch nn.Linear defaults:
    weight, bias ~ U(-1/sqrt(fan_in), 1/sqrt(fan_in)).
    Weights are stored as (in_features, out_features)."""
    dims = [(input_dim, HIDDEN), (HIDDEN, HIDDEN), (HIDDEN, output_dim)]
    params = []
    for (fan_in, fan_out) in dims:
        key, kw, kb = jax.random.split(key, 3)
        bound = 1.0 / (fan_in ** 0.5)
        w = jax.random.uniform(kw, (fan_in, fan_out), jnp.float32, -bound, bound)
        b = jax.random.uniform(kb, (1, fan_out), jnp.float32, -bound, bound)
        params.extend([w, b])
    return tuple(params)


def _reference_forward(x, params):
    w1, b1, w2, b2, w3, b3 = params
    h1 = jnp.maximum(x @ w1 + b1, 0.0)
    h2 = jnp.maximum(h1 @ w2 + b2, 0.0)
    return h2 @ w3 + b3


if __name__ == "__main__":
    key = jax.random.PRNGKey(0)
    k_param, k_x1, k_x2 = jax.random.split(key, 3)

    input_dim, output_dim = 32, 4
    params = init_params(k_param, input_dim, output_dim)
    padded, d_out = prepare_params(params)

    # Test 1: tiny batch (single partial tile).
    x1 = jax.random.normal(k_x1, (10, input_dim), jnp.float32)
    out1 = jax.block_until_ready(as_regression_forward(x1, padded, d_out))
    ref1 = _reference_forward(x1, params)
    assert out1.shape == (10, output_dim)
    assert jnp.allclose(out1, ref1, atol=2e-2, rtol=2e-2), "mismatch (B=10)"

    # Test 2: multi-tile grid with a partial last block (exercises the
    # >=2-tile v7x path: bm=512, grid=2, last tile has 8 live rows).
    x2 = jax.random.normal(k_x2, (520, input_dim), jnp.float32)
    out2 = jax.block_until_ready(as_regression_forward(x2, padded, d_out))
    ref2 = _reference_forward(x2, params)
    assert out2.shape == (520, output_dim)
    assert jnp.allclose(out2, ref2, atol=2e-2, rtol=2e-2), "mismatch (B=520)"

    print("KERNEL_OK")
</pallas_src>

<mosaic_0001>
module attributes {stable_mosaic.version = 11 : i64} {
  func.func @_mlp_kernel(%arg0: i32, %arg1: memref<16x32xf32, #tpu.memory_space<vmem>>, %arg2: memref<32x256xbf16, #tpu.memory_space<vmem>>, %arg3: memref<1x256xf32, #tpu.memory_space<vmem>>, %arg4: memref<256x256xbf16, #tpu.memory_space<vmem>>, %arg5: memref<1x256xf32, #tpu.memory_space<vmem>>, %arg6: memref<256x128xbf16, #tpu.memory_space<vmem>>, %arg7: memref<1x128xf32, #tpu.memory_space<vmem>>, %arg8: memref<16x128xf32, #tpu.memory_space<vmem>>) attributes {dimension_semantics = [#tpu.dimension_semantics<parallel>], iteration_bounds = array<i64: 1>, scalar_prefetch = 0 : i64, scratch_operands = 0 : i64, tpu.core_type = #tpu.core_type<tc>, window_params = [{transform_indices = @transform_0, window_bounds = array<i64: 16, 32>}, {pipeline_mode = #tpu.pipeline_mode<synchronous>, transform_indices = @transform_1, window_bounds = array<i64: 32, 256>}, {pipeline_mode = #tpu.pipeline_mode<synchronous>, transform_indices = @transform_2, window_bounds = array<i64: 1, 256>}, {pipeline_mode = #tpu.pipeline_mode<synchronous>, transform_indices = @transform_3, window_bounds = array<i64: 256, 256>}, {pipeline_mode = #tpu.pipeline_mode<synchronous>, transform_indices = @transform_4, window_bounds = array<i64: 1, 256>}, {pipeline_mode = #tpu.pipeline_mode<synchronous>, transform_indices = @transform_5, window_bounds = array<i64: 256, 128>}, {pipeline_mode = #tpu.pipeline_mode<synchronous>, transform_indices = @transform_6, window_bounds = array<i64: 1, 128>}, {transform_indices = @transform_7, window_bounds = array<i64: 16, 128>}]} {
    %c0 = arith.constant 0 : index
    %c0_0 = arith.constant 0 : index
    %0 = vector.load %arg1[%c0, %c0_0] : memref<16x32xf32, #tpu.memory_space<vmem>>, vector<16x32xf32>
    %1 = arith.truncf %0 : vector<16x32xf32> to vector<16x32xbf16>
    %c0_1 = arith.constant 0 : index
    %c0_2 = arith.constant 0 : index
    %2 = vector.load %arg2[%c0_1, %c0_2] : memref<32x256xbf16, #tpu.memory_space<vmem>>, vector<32x256xbf16>
    %cst = arith.constant dense<0.000000e+00> : vector<16x256xf32>
    %3 = tpu.matmul %1, %2, %cst {dimension_numbers = #tpu.dot_dimension_numbers<[1], [0], [0], [1], [0, 0, 1, 1], [], []>} : vector<16x32xbf16>, vector<32x256xbf16>, vector<16x256xf32> -> vector<16x256xf32>
    %c0_3 = arith.constant 0 : index
    %c0_4 = arith.constant 0 : index
    %4 = vector.load %arg3[%c0_3, %c0_4] : memref<1x256xf32, #tpu.memory_space<vmem>>, vector<1x256xf32>
    %5 = vector.broadcast %4 : vector<1x256xf32> to vector<16x256xf32>
    %6 = arith.addf %3, %5 : vector<16x256xf32>
    %cst_5 = arith.constant 0.000000e+00 : f32
    %7 = vector.broadcast %cst_5 : f32 to vector<16x256xf32>
    %8 = arith.maximumf %6, %7 : vector<16x256xf32>
    %9 = arith.truncf %8 : vector<16x256xf32> to vector<16x256xbf16>
    %c0_6 = arith.constant 0 : index
    %c0_7 = arith.constant 0 : index
    %10 = vector.load %arg4[%c0_6, %c0_7] : memref<256x256xbf16, #tpu.memory_space<vmem>>, vector<256x256xbf16>
    %cst_8 = arith.constant dense<0.000000e+00> : vector<16x256xf32>
    %11 = tpu.matmul %9, %10, %cst_8 {dimension_numbers = #tpu.dot_dimension_numbers<[1], [0], [0], [1], [0, 0, 1, 1], [], []>} : vector<16x256xbf16>, vector<256x256xbf16>, vector<16x256xf32> -> vector<16x256xf32>
    %c0_9 = arith.constant 0 : index
    %c0_10 = arith.constant 0 : index
    %12 = vector.load %arg5[%c0_9, %c0_10] : memref<1x256xf32, #tpu.memory_space<vmem>>, vector<1x256xf32>
    %13 = vector.broadcast %12 : vector<1x256xf32> to vector<16x256xf32>
    %14 = arith.addf %11, %13 : vector<16x256xf32>
    %cst_11 = arith.constant 0.000000e+00 : f32
    %15 = vector.broadcast %cst_11 : f32 to vector<16x256xf32>
    %16 = arith.maximumf %14, %15 : vector<16x256xf32>
    %17 = arith.truncf %16 : vector<16x256xf32> to vector<16x256xbf16>
    %c0_12 = arith.constant 0 : index
    %c0_13 = arith.constant 0 : index
    %18 = vector.load %arg6[%c0_12, %c0_13] : memref<256x128xbf16, #tpu.memory_space<vmem>>, vector<256x128xbf16>
    %cst_14 = arith.constant dense<0.000000e+00> : vector<16x128xf32>
    %19 = tpu.matmul %17, %18, %cst_14 {dimension_numbers = #tpu.dot_dimension_numbers<[1], [0], [0], [1], [0, 0, 1, 1], [], []>} : vector<16x256xbf16>, vector<256x128xbf16>, vector<16x128xf32> -> vector<16x128xf32>
    %c0_15 = arith.constant 0 : index
    %c0_16 = arith.constant 0 : index
    %20 = vector.load %arg7[%c0_15, %c0_16] : memref<1x128xf32, #tpu.memory_space<vmem>>, vector<1x128xf32>
    %21 = vector.broadcast %20 : vector<1x128xf32> to vector<16x128xf32>
    %22 = arith.addf %19, %21 : vector<16x128xf32>
    %c0_17 = arith.constant 0 : index
    %c0_18 = arith.constant 0 : index
    %23 = vector.load %arg8[%c0_17, %c0_18] : memref<16x128xf32, #tpu.memory_space<vmem>>, vector<16x128xf32>
    tpu.vector_store %arg8[%c0_17, %c0_18], %22 {strides = array<i32>} : memref<16x128xf32, #tpu.memory_space<vmem>>, vector<16x128xf32>,
    return
  }
  func.func @transform_0(%arg0: i32) -> (i32, i32) {
    %c0_i32 = arith.constant 0 : i32
    %c0_i32_0 = arith.constant 0 : i32
    return %arg0, %c0_i32 : i32, i32
  }
  func.func @transform_1(%arg0: i32) -> (i32, i32) {
    %c0_i32 = arith.constant 0 : i32
    %c0_i32_0 = arith.constant 0 : i32
    %c0_i32_1 = arith.constant 0 : i32
    return %c0_i32, %c0_i32_0 : i32, i32
  }
  func.func @transform_2(%arg0: i32) -> (i32, i32) {
    %c0_i32 = arith.constant 0 : i32
    %c0_i32_0 = arith.constant 0 : i32
    %c0_i32_1 = arith.constant 0 : i32
    return %c0_i32, %c0_i32_0 : i32, i32
  }
  func.func @transform_3(%arg0: i32) -> (i32, i32) {
    %c0_i32 = arith.constant 0 : i32
    %c0_i32_0 = arith.constant 0 : i32
    %c0_i32_1 = arith.constant 0 : i32
    return %c0_i32, %c0_i32_0 : i32, i32
  }
  func.func @transform_4(%arg0: i32) -> (i32, i32) {
    %c0_i32 = arith.constant 0 : i32
    %c0_i32_0 = arith.constant 0 : i32
    %c0_i32_1 = arith.constant 0 : i32
    return %c0_i32, %c0_i32_0 : i32, i32
  }
  func.func @transform_5(%arg0: i32) -> (i32, i32) {
    %c0_i32 = arith.constant 0 : i32
    %c0_i32_0 = arith.constant 0 : i32
    %c0_i32_1 = arith.constant 0 : i32
    return %c0_i32, %c0_i32_0 : i32, i32
  }
  func.func @transform_6(%arg0: i32) -> (i32, i32) {
    %c0_i32 = arith.constant 0 : i32
    %c0_i32_0 = arith.constant 0 : i32
    %c0_i32_1 = arith.constant 0 : i32
    return %c0_i32, %c0_i32_0 : i32, i32
  }
  func.func @transform_7(%arg0: i32) -> (i32, i32) {
    %c0_i32 = arith.constant 0 : i32
    %c0_i32_0 = arith.constant 0 : i32
    return %arg0, %c0_i32 : i32, i32
  }
}

</mosaic_0001>

<bundles_post_ra>
// kernel: as_regression_forward.1
= control target key start
LH: loop header
LB: loop body
LE: loop exit
PB: predicated region body
PF: predicated region fallthrough
CT: control target
= control target key end

     0   :  { %12 = vsyncpa [#allocation3], 0  ;;  %s996_s0 = inlined_call_operand.hbm [shape: f32[10,32], index: 0, kind: input, shape index: {}]   ;;  %s997_s1 = inlined_call_operand.hbm [shape: bf16[32,256], index: 1, kind: input, shape index: {}]   ;;  %s998_s2 = inlined_call_operand.vmem [shape: f32[1,256], index: 2, kind: input, shape index: {}]   ;;  %s999_s3 = inlined_call_operand.hbm [shape: bf16[256,256], index: 3, kind: input, shape index: {}]   ;;  %s1000_s4 = inlined_call_operand.vmem [shape: f32[1,256], index: 4, kind: input, shape index: {}]   ;;  %s1001_s5 = inlined_call_operand.hbm [shape: bf16[256,128], index: 5, kind: input, shape index: {}]   ;;  %s1002_s6 = inlined_call_operand.vmem [shape: f32[1,128], index: 6, kind: input, shape index: {}]   ;;  %s1003_s7 = inlined_call_operand.vmem [shape: f32[10,128], index: 7, kind: output, shape index: {}]  }
   0x1   :  { %13 = vsyncpa [#allocation5], 0 }
   0x2   :  { %14 = vsyncpa [#allocation8], 0  ;;  %s861_s24 = smov [#allocation4]   ;;  %s862_s26 = smov [#allocation2]  }
   0x3   :  { %s32_s25 = sshll.u32 %s861_s24, 4  ;;  %s20_s27 = sshll.u32 %s862_s26, 4  ;;  %s33_s25 = int_to_ptr.vmem [resolvable:$true] %s32_s25  ;;  %s910_s27 = int_to_ptr.vmem [resolvable:$true] %s20_s27 }
   0x4   :  { %s767_s30 = scalar_lea.hbm %s997_s1, 512 }
   0x5   :  { %p768_p0 = scmp.ne.s32.totalorder %s997_s1, %s767_s30  ;;  %p771_p1 = scmp.lt.u32.totalorder %s767_s30, %s997_s1 }
   0x7   :  { %p773_p2 = pnand %p771_p1, %p768_p0 }
   0x9   :  { %776 = shalt.err (!%p773_p2)
}
   0xa   :  { %s777_s12 = scalar_lea.vmem %s33_s25, 512  ;;  %p782_p4 = scmp.lt.s32.totalorder %s33_s25, %s33_s25 }
   0xb   :  { %p778_p3 = scmp.ne.s32.totalorder %s33_s25, %s777_s12  ;;  %p783_p5 = scmp.lt.s32.totalorder %s777_s12, %s777_s12 }
   0xd   :  { %p784_p6 = por %p783_p5, %p782_p4 }
   0xf   :  { %p785_p7 = pnand %p784_p6, %p778_p3 }
  0x11   :  { %788 = shalt.err (!%p785_p7)
}
  0x12   :  { %s863_s13 = smov 128   ;;  %s864_s14 = smov 8  }
  0x13   :  { %38 = dma.hbm_to_vmem [thread:$0]  %s997_s1, 512, %s33_s25, [#allocation5], %s863_s13, %s863_s13, %s864_s14  }
  0x14   :  { %s789_s19 = scalar_lea.hbm %s996_s0, 256 }
  0x15   :  { %p790_p8 = scmp.ne.s32.totalorder %s996_s0, %s789_s19  ;;  %p793_p9 = scmp.lt.u32.totalorder %s789_s19, %s996_s0 }
  0x17   :  { %p795_p10 = pnand %p793_p9, %p790_p8 }
  0x19   :  { %798 = shalt.err (!%p795_p10)
}
  0x1a   :  { %s799_s24 = scalar_lea.vmem %s910_s27, 256  ;;  %p804_p12 = scmp.lt.s32.totalorder %s910_s27, %s910_s27 }
  0x1b   :  { %p800_p11 = scmp.ne.s32.totalorder %s910_s27, %s799_s24  ;;  %p805_p13 = scmp.lt.s32.totalorder %s799_s24, %s799_s24 }
  0x1d   :  { %p806_p0 = por %p805_p13, %p804_p12 }
  0x1f   :  { %p807_p1 = pnand %p806_p0, %p800_p11 }
  0x21   :  { %810 = shalt.err (!%p807_p1)
}
  0x22   :  { %26 = dma.hbm_to_vmem [thread:$0]  %s996_s0, 256, %s910_s27, [#allocation3], %s863_s13, %s863_s13, %s864_s14  }
  0x23   :  { %s865_s26 = smov [#allocation6]   ;;  %s866_s29 = smov [#allocation7]  }
  0x24   :  { %s46_s28 = sshll.u32 %s865_s26, 4  ;;  %s60_s30 = sshll.u32 %s866_s29, 4  ;;  %s47_s28 = int_to_ptr.vmem [resolvable:$true] %s46_s28  ;;  %s947_s30 = int_to_ptr.vmem [resolvable:$true] %s60_s30 }
  0x25   :  { %s811_s10 = scalar_lea.hbm %s999_s3, 4096 }
  0x26   :  { %p812_p2 = scmp.ne.s32.totalorder %s999_s3, %s811_s10  ;;  %p815_p3 = scmp.lt.u32.totalorder %s811_s10, %s999_s3 }
  0x28   :  { %p817_p4 = pnand %p815_p3, %p812_p2 }
  0x2a   :  { %820 = shalt.err (!%p817_p4)
}
  0x2b   :  { %s821_s0 = scalar_lea.vmem %s47_s28, 4096  ;;  %p826_p6 = scmp.lt.s32.totalorder %s47_s28, %s47_s28 }
  0x2c   :  { %p822_p5 = scmp.ne.s32.totalorder %s47_s28, %s821_s0  ;;  %p827_p7 = scmp.lt.s32.totalorder %s821_s0, %s821_s0 }
  0x2e   :  { %p828_p8 = por %p827_p7, %p826_p6 }
  0x30   :  { %p829_p9 = pnand %p828_p8, %p822_p5 }
  0x32   :  { %832 = shalt.err (!%p829_p9)
}
  0x33   :  { %52 = dma.hbm_to_vmem [thread:$0]  %s999_s3, 4096, %s47_s28, [#allocation5], %s863_s13, %s863_s13, %s864_s14  }
  0x34   :  { %s833_s20 = scalar_lea.hbm %s1001_s5, 2048 }
  0x35   :  { %p834_p10 = scmp.ne.s32.totalorder %s1001_s5, %s833_s20  ;;  %p837_p11 = scmp.lt.u32.totalorder %s833_s20, %s1001_s5 }
  0x37   :  { %p839_p12 = pnand %p837_p11, %p834_p10 }
  0x39   :  { %842 = shalt.err (!%p839_p12)
}
  0x3a   :  { %s843_s1 = scalar_lea.vmem %s947_s30, 2048  ;;  %p848_p0 = scmp.lt.s32.totalorder %s947_s30, %s947_s30 }
  0x3b   :  { %p844_p13 = scmp.ne.s32.totalorder %s947_s30, %s843_s1  ;;  %p849_p1 = scmp.lt.s32.totalorder %s843_s1, %s843_s1 }
  0x3d   :  { %p850_p2 = por %p849_p1, %p848_p0 }
  0x3f   :  { %p851_p3 = pnand %p850_p2, %p844_p13 }
  0x41   :  { %854 = shalt.err (!%p851_p3)
}
  0x42   :  { %s867_s3 = smov 64   ;;  %s868_s13 = smov 4  }
  0x43   :  { %66 = dma.hbm_to_vmem [thread:$0]  %s1001_s5, 2048, %s947_s30, [#allocation8], %s867_s3, %s867_s3, %s868_s13  }
  0x44   :  { %855 = dma.done.wait [#allocation3], 256  }
  0x45   :  { %856 = vsyncadd [#allocation3], 4294967040 }
  0x46   :  { %857 = dma.done.wait [#allocation5], 4608  }
  0x47   :  { %858 = vsyncadd [#allocation5], 4294962688 }
  0x48   :  { %859 = dma.done.wait [#allocation8], 2048  }
  0x49   :  { %860 = vsyncadd [#allocation8], 4294965248  ;;  %v869_v0 = vmov 0   ;;  %v697_v1 = vld [vmem:[#allocation4 + $0x4] ss:$8 sps:$4 sm:$0xff]   ;;  %v82_v5 = vld [vmem:[#allocation2] sm:$0xff]  ;;  %v91_v51 = vlaneseq }
  0x4a   :  { %157 = vmatprep.mubr.bf16.mxu0 %v869_v0  ;;  %v699_v2 = vld [vmem:[#allocation4] ss:$8 sps:$4 sm:$0xff]   ;;  %125 = vmatprep.subr.bf16.mxu0 %v697_v1  ;;  %v700_v3 = vld [vmem:[#allocation4 + $0x14] ss:$8 sps:$4 sm:$0xff]   ;;  %v702_v4 = vld [vmem:[#allocation4 + $0x10] ss:$8 sps:$4 sm:$0xff]  }
  0x4b   :  { %126 = vmatpush1.bf16.msra.mxu0 %v699_v2  ;;  %v83_v6 = vld [vmem:[#allocation2 + $0x8] sm:$0xff]  ;;  %v703_v7 = vld [vmem:[#allocation6 + $0x4] ss:$8 sps:$4 sm:$0xff]   ;;  %v705_v8 = vld [vmem:[#allocation6] ss:$8 sps:$4 sm:$0xff]   ;;  %vm121_vm0 = vcmask 261120  }
  0x4c   :  { %127 = vmatprep.subr.bf16.mxu0 %v700_v3  ;;  %v706_v9 = vld [vmem:[#allocation6 + $0x14] ss:$8 sps:$4 sm:$0xff]   ;;  %v84_v10 = vpack.c.bf16 %v83_v6, %v82_v5  ;;  %378 = vmatprep.subr.bf16.mxu1 %v703_v7  ;;  %v708_v11 = vld [vmem:[#allocation6 + $0x10] ss:$8 sps:$4 sm:$0xff]   ;;  %v709_v12 = vld [vmem:[#allocation6 + $0x24] ss:$8 sps:$4 sm:$0xff]  }
  0x4d   :  { %379 = vmatpush1.bf16.msra.mxu1 %v705_v8  ;;  %v711_v13 = vld [vmem:[#allocation6 + $0x20] ss:$8 sps:$4 sm:$0xff]   ;;  %v712_v14 = vld [vmem:[#allocation6 + $0x34] ss:$8 sps:$4 sm:$0xff]   ;;  %v714_v15 = vld [vmem:[#allocation6 + $0x30] ss:$8 sps:$4 sm:$0xff]  }
  0x4e   :  { %380 = vmatprep.subr.bf16.mxu1 %v706_v9  ;;  %v715_v16 = vld [vmem:[#allocation6 + $0x44] ss:$8 sps:$4 sm:$0xff]   ;;  %v717_v17 = vld [vmem:[#allocation6 + $0x40] ss:$8 sps:$4 sm:$0xff]   ;;  %v718_v18 = vld [vmem:[#allocation6 + $0x54] ss:$8 sps:$4 sm:$0xff]  }
  0x4f   :  { %128 = vmatpush1.bf16.msra.mxu0 %v702_v4  ;;  %v720_v19 = vld [vmem:[#allocation6 + $0x50] ss:$8 sps:$4 sm:$0xff]   ;;  %v721_v20 = vld [vmem:[#allocation6 + $0x64] ss:$8 sps:$4 sm:$0xff]   ;;  %v723_v21 = vld [vmem:[#allocation6 + $0x60] ss:$8 sps:$4 sm:$0xff]  }
  0x50   :  { %v724_v22 = vld [vmem:[#allocation6 + $0x74] ss:$8 sps:$4 sm:$0xff]   ;;  %v726_v23 = vld [vmem:[#allocation6 + $0x70] ss:$8 sps:$4 sm:$0xff]   ;;  %v727_v24 = vld [vmem:[#allocation6 + $0x84] ss:$8 sps:$4 sm:$0xff]  }
  0x51   :  { %381 = vmatpush1.bf16.msra.mxu1 %v708_v11  ;;  %v729_v25 = vld [vmem:[#allocation6 + $0x80] ss:$8 sps:$4 sm:$0xff]   ;;  %v730_v26 = vld [vmem:[#allocation6 + $0x94] ss:$8 sps:$4 sm:$0xff]   ;;  %v732_v27 = vld [vmem:[#allocation6 + $0x90] ss:$8 sps:$4 sm:$0xff]  }
  0x52   :  { %616 = vmatmul.mubr.msk.bf16.vlgmr.msra.gmra.mrb[0].mxu0 %vm121_vm0, %v84_v10  ;;  %382 = vmatprep.subr.bf16.mxu1 %v709_v12  ;;  %v733_v28 = vld [vmem:[#allocation6 + $0xa4] ss:$8 sps:$4 sm:$0xff]   ;;  %v735_v29 = vld [vmem:[#allocation6 + $0xa0] ss:$8 sps:$4 sm:$0xff]   ;;  %v736_v30 = vld [vmem:[#allocation6 + $0xb4] ss:$8 sps:$4 sm:$0xff]  }
  0x53   :  { %v738_v31 = vld [vmem:[#allocation6 + $0xb0] ss:$8 sps:$4 sm:$0xff]   ;;  %v739_v32 = vld [vmem:[#allocation6 + $0xc4] ss:$8 sps:$4 sm:$0xff]   ;;  %v741_v33 = vld [vmem:[#allocation6 + $0xc0] ss:$8 sps:$4 sm:$0xff]  }
  0x54   :  { %v742_v34 = vld [vmem:[#allocation6 + $0xd4] ss:$8 sps:$4 sm:$0xff]   ;;  %v744_v35 = vld [vmem:[#allocation6 + $0xd0] ss:$8 sps:$4 sm:$0xff]   ;;  %v745_v36 = vld [vmem:[#allocation6 + $0xe4] ss:$8 sps:$4 sm:$0xff]  }
  0x55   :  { %383 = vmatpush1.bf16.msra.mxu1 %v711_v13  ;;  %v747_v37 = vld [vmem:[#allocation6 + $0xe0] ss:$8 sps:$4 sm:$0xff]   ;;  %v748_v38 = vld [vmem:[#allocation6 + $0xf4] ss:$8 sps:$4 sm:$0xff]   ;;  %v750_v39 = vld [vmem:[#allocation6 + $0xf0] ss:$8 sps:$4 sm:$0xff]  }
  0x56   :  { %384 = vmatprep.subr.bf16.mxu1 %v712_v14  ;;  %v751_v40 = vld [vmem:[#allocation7 + $0x40] sm:$0xff]   ;;  %v753_v42 = vld [vmem:[#allocation7 + $0x48] sm:$0xff]   ;;  %v755_v44 = vld [vmem:[#allocation7 + $0x50] sm:$0xff]   ;;  %v92_v52 = vshrl.u32 %v91_v51, 7 }
  0x57   :  { %v752_v41 = vld [vmem:[#allocation7] sm:$0xff]   ;;  %666 = vmatprep.subr.bf16.mxu0 %v751_v40  ;;  %v754_v43 = vld [vmem:[#allocation7 + $0x8] sm:$0xff]   ;;  %v756_v45 = vld [vmem:[#allocation7 + $0x10] sm:$0xff]  }
  0x58   :  { %667 = vmatpush3.bf16.msra.mxu0 %v752_v41  ;;  %v757_v46 = vld [vmem:[#allocation7 + $0x58] sm:$0xff]   ;;  %v759_v48 = vld [vmem:[#allocation7 + $0x60] sm:$0xff]   ;;  %v761_v50 = vld [vmem:[#allocation7 + $0x68] sm:$0xff]   ;;  %v93_v53 = vsub.s32 0, %v92_v52  ;;  %v97_v55 = vsub.s32 1, %v92_v52 }
  0x59   :  { %385 = vmatpush1.bf16.msra.mxu1 %v714_v15  ;;  %668 = vmatprep.subr.bf16.mxu0 %v753_v42  ;;  %v758_v47 = vld [vmem:[#allocation7 + $0x18] sm:$0xff]   ;;  %v760_v49 = vld [vmem:[#allocation7 + $0x20] sm:$0xff]   ;;  %v89_v54 = vld [vmem:[%s998_s2] sm:$0x3] }
  0x5a   :  { %386 = vmatprep.subr.bf16.mxu1 %v715_v16  ;;  %v94_v56 = vrot.slane %v89_v54, %v93_v53  ;;  %v98_v57 = vrot.slane %v89_v54, %v97_v55  ;;  %v762_v8 = vld [vmem:[#allocation7 + $0x28] sm:$0xff]   ;;  %v763_v9 = vld [vmem:[#allocation7 + $0x70] sm:$0xff]   ;;  %v765_v11 = vld [vmem:[#allocation7 + $0x78] sm:$0xff]  }
  0x5b   :  { %v764_v10 = vld [vmem:[#allocation7 + $0x30] sm:$0xff]   ;;  %v766_v12 = vld [vmem:[#allocation7 + $0x38] sm:$0xff]  }
  0x5c   :  { %669 = vmatpush3.bf16.msra.mxu0 %v754_v43  ;;  %v206_v13 = vld [vmem:[%s1000_s4] sm:$0x3] }
  0x5d   :  { %387 = vmatpush1.bf16.msra.mxu1 %v717_v17  ;;  %670 = vmatprep.subr.bf16.mxu0 %v755_v44  ;;  %v211_v14 = vrot.slane %v206_v13, %v93_v53  ;;  %v215_v15 = vrot.slane %v206_v13, %v97_v55 }
  0x5e   :  { %388 = vmatprep.subr.bf16.mxu1 %v718_v18 }
  0x60   :  { %671 = vmatpush3.bf16.msra.mxu0 %v756_v45 }
  0x61   :  { %389 = vmatpush1.bf16.msra.mxu1 %v720_v19  ;;  %672 = vmatprep.subr.bf16.mxu0 %v757_v46 }
  0x62   :  { %390 = vmatprep.subr.bf16.mxu1 %v721_v20 }
  0x64   :  { %673 = vmatpush3.bf16.msra.mxu0 %v758_v47 }
  0x65   :  { %391 = vmatpush1.bf16.msra.mxu1 %v723_v21  ;;  %674 = vmatprep.subr.bf16.mxu0 %v759_v48 }
  0x66   :  { %392 = vmatprep.subr.bf16.mxu1 %v724_v22 }
  0x68   :  { %675 = vmatpush3.bf16.msra.mxu0 %v760_v49 }
  0x69   :  { %393 = vmatpush1.bf16.msra.mxu1 %v726_v23  ;;  %676 = vmatprep.subr.bf16.mxu0 %v761_v50 }
  0x6a   :  { %394 = vmatprep.subr.bf16.mxu1 %v727_v24 }
  0x6c   :  { %677 = vmatpush3.bf16.msra.mxu0 %v762_v8 }
  0x6d   :  { %395 = vmatpush1.bf16.msra.mxu1 %v729_v25  ;;  %678 = vmatprep.subr.bf16.mxu0 %v763_v9 }
  0x6e   :  { %396 = vmatprep.subr.bf16.mxu1 %v730_v26 }
  0x70   :  { %679 = vmatpush3.bf16.msra.mxu0 %v764_v10 }
  0x71   :  { %397 = vmatpush1.bf16.msra.mxu1 %v732_v27  ;;  %680 = vmatprep.subr.bf16.mxu0 %v765_v11 }
  0x72   :  { %398 = vmatprep.subr.bf16.mxu1 %v733_v28 }
  0x74   :  { %681 = vmatpush3.bf16.msra.mxu0 %v766_v12 }
  0x75   :  { %399 = vmatpush1.bf16.msra.mxu1 %v735_v29 }
  0x76   :  { %400 = vmatprep.subr.bf16.mxu1 %v736_v30 }
  0x79   :  { %401 = vmatpush1.bf16.msra.mxu1 %v738_v31  ;;  %v649_v31 = vld [vmem:[%s1002_s6] ss:$0 sm:$0xff] }
  0x7a   :  { %402 = vmatprep.subr.bf16.mxu1 %v739_v32 }
  0x7d   :  { %403 = vmatpush1.bf16.msra.mxu1 %v741_v33 }
  0x7e   :  { %404 = vmatprep.subr.bf16.mxu1 %v742_v34 }
  0x81   :  { %405 = vmatpush1.bf16.msra.mxu1 %v744_v35 }
  0x82   :  { %406 = vmatprep.subr.bf16.mxu1 %v745_v36 }
  0x85   :  { %407 = vmatpush1.bf16.msra.mxu1 %v747_v37 }
  0x86   :  { %408 = vmatprep.subr.bf16.mxu1 %v748_v38 }
  0x89   :  { %409 = vmatpush1.bf16.msra.mxu1 %v750_v39 }
 0x125   :  { %v159_v58 = vpop.f32.mrb[0].mxu0 }
 0x126   :  { %v160_v59 = vadd.f32 %v159_v58, %v94_v56  ;;  %v161_v60 = vpop.f32.mrb[1].mxu0 }
 0x127   :  { %v162_v61 = vadd.f32 %v161_v60, %v98_v57  ;;  %v163_v62 = vpop.f32.mrb[2].mxu0 }
 0x128   :  { %v164_v63 = vadd.f32 %v163_v62, %v94_v56  ;;  %v165_v0 = vpop.f32.mrb[3].mxu0  ;;  %v168_v2 = vmax.f32 %v160_v59, 0.0 }
 0x129   :  { %v166_v1 = vadd.f32 %v165_v0, %v98_v57  ;;  %v169_v4 = vmax.f32 %v162_v61, 0.0 }
 0x12a   :  { %v170_v3 = vmax.f32 %v164_v63, 0.0 }
 0x12b   :  { %v171_v5 = vmax.f32 %v166_v1, 0.0 }
 0x12c   :  { %v172_v6 = vpack.c.bf16 %v170_v3, %v168_v2 }
 0x12d   :  { %v173_v7 = vpack.c.bf16 %v171_v5, %v169_v4 }
 0x12f   :  { %410 = vmatprep.mubr.bf16.mxu1 %v173_v7 }
 0x130   :  { %411 = vmatmul.mubr.bf16.vlgmr.msra.gmra.mrb[0].mxu1 %v172_v6 }
 0x203   :  { %v412_v16 = vpop.f32.mrb[0].mxu1 }
 0x204   :  { %v413_v17 = vadd.f32 %v412_v16, %v211_v14  ;;  %v414_v18 = vpop.f32.mrb[1].mxu1 }
 0x205   :  { %v415_v19 = vadd.f32 %v414_v18, %v215_v15  ;;  %v416_v20 = vpop.f32.mrb[2].mxu1 }
 0x206   :  { %v417_v21 = vadd.f32 %v416_v20, %v211_v14  ;;  %v418_v22 = vpop.f32.mrb[3].mxu1  ;;  %v421_v24 = vmax.f32 %v413_v17, 0.0 }
 0x207   :  { %v419_v23 = vadd.f32 %v418_v22, %v215_v15  ;;  %v422_v26 = vmax.f32 %v415_v19, 0.0 }
 0x208   :  { %v423_v25 = vmax.f32 %v417_v21, 0.0 }
 0x209   :  { %v424_v27 = vmax.f32 %v419_v23, 0.0 }
 0x20a   :  { %v425_v28 = vpack.c.bf16 %v423_v25, %v421_v24 }
 0x20b   :  { %v426_v29 = vpack.c.bf16 %v424_v27, %v422_v26 }
 0x20d   :  { %594 = vmatprep.mubr.bf16.mxu0 %v426_v29 }
 0x20e   :  { %595 = vmatmul.mubr.bf16.vlgmr.msra.gmra.mrb[4].mxu0 %v425_v28 }
 0x2e1   :  { %v682_v30 = vpop.f32.mrb[4].mxu0 }
 0x2e2   :  { %v683_v32 = vpop.f32.mrb[5].mxu0 }
 0x2e3   :  { %v684_v33 = vadd.f32 %v683_v32, %v682_v30  ;;  %v685_v34 = vpop.f32.mrb[6].mxu0 }
 0x2e4   :  { %v686_v35 = vpop.f32.mrb[7].mxu0 }
 0x2e5   :  { %v597_v36 = vadd.f32 %v684_v33, %v649_v31  ;;  %v687_v37 = vadd.f32 %v686_v35, %v685_v34 }
 0x2e7   :  { %603 = vst [vmem:[%s1003_s7] sm:$0xff] %v597_v36  ;;  %v600_v38 = vadd.f32 %v687_v37, %v649_v31 }
 0x2e9   :  { %604 = vst [vmem:[%s1003_s7 + $0x8] sm:$0xff] %v600_v38 }
 0x2ea   :  { %609 = vsyncpa [#allocation3], 1 }
 0x2eb   :  { %610 = vsyncpa [#allocation5], 1 }
 0x2ec   :  { %611 = vsyncpa [#allocation8], 1 }

</bundles_post_ra>
